<compile_context>
chip_gen: v7x
topology: tpu7x:2x2x1
jax: 0.10.0
libtpu: 0.0.40
codegen_flags: <defaults>
</compile_context>

<pallas_src>
import functools

import jax
import jax.numpy as jnp
from jax.experimental import pallas as pl
from jax.experimental.pallas import tpu as pltpu


# ---------------------------------------------------------------------------
# Stage 1: feature extractor (1x1 conv -> ReLU -> global average pool)
# ---------------------------------------------------------------------------
def conv_pool_kernel(x_ref, wbd_ref, bcp_ref, o_ref, acc_ref, *,
                     feat_dim, k_pack, acc_lanes, inv_s):
    ci = pl.program_id(1)

    @pl.when(ci == 0)
    def _init():
        acc_ref[...] = jnp.zeros_like(acc_ref)

    # In-kernel f32 -> bf16 cast (VPU) right before the MXU op; x streams from
    # HBM exactly once, no wrapper-side cast pass.
    xb = x_ref[0].astype(jnp.bfloat16)                       # (C*k, lane_tile)

    # 1x1 conv for k pixel chunks at once via the block-diagonal packed weight:
    # (F*k, C*k) @ (C*k, lane_tile), f32 accumulation, fused bias + ReLU.
    h = jnp.dot(wbd_ref[...], xb, preferred_element_type=jnp.float32)
    h = jnp.maximum(h + bcp_ref[...], 0.0)                   # (F*k, lane_tile)

    # Lane-preserving partial pool: fold 128-lane tiles into a lane-dense
    # accumulator with pure VALU vreg adds (no per-step XLU cross-lane reduce).
    lt = h.shape[1]
    if acc_lanes > 1:
        p = h[:, :acc_lanes]
        for t in range(1, lt // acc_lanes):
            p = p + h[:, t * acc_lanes:(t + 1) * acc_lanes]
    else:
        # Fallback when the packed lane extent is not a 128 multiple.
        # TODO(synk): pad the spatial axis to a 128 multiple and subtract the
        # n_pad * relu(bias) padding contribution at finalize instead.
        p = jnp.sum(h, axis=1, keepdims=True)
    acc_ref[...] += p

    @pl.when(ci == pl.num_programs(1) - 1)
    def _finalize():
        # One-time cross-sublane + cross-lane reduce, then mean scaling.
        a = acc_ref[...].reshape(feat_dim, k_pack * acc_lanes)
        feat = jnp.sum(a, axis=1) * inv_s                    # (F,)
        o_ref[...] = feat.reshape(1, 1, feat_dim).astype(o_ref.dtype)


# ---------------------------------------------------------------------------
# Stage 2: batched MLP head (fc1 in split-weight form == concat-first)
# ---------------------------------------------------------------------------
def head_kernel(feat_ref, meta_ref, w1f_ref, w1m_ref, b1_ref,
                w2_ref, b2_ref, w3_ref, b3_ref, o_ref):
    feat = feat_ref[:, 0, :]                                 # (B, F) pooled features
    meta = meta_ref[...]                                     # (B, K)
    h1 = jnp.dot(feat, w1f_ref[...], preferred_element_type=jnp.float32)
    h1 = h1 + jnp.dot(meta, w1m_ref[...], preferred_element_type=jnp.float32)
    h1 = jnp.maximum(h1 + b1_ref[...], 0.0)                  # (B, 128)
    h2 = jnp.maximum(
        jnp.dot(h1, w2_ref[...], preferred_element_type=jnp.float32) + b2_ref[...],
        0.0)                                                 # (B, 64)
    out = jnp.dot(h2, w3_ref[...], preferred_element_type=jnp.float32) + b3_ref[...]
    o_ref[...] = out.astype(o_ref.dtype)                     # (B, out_dim) lane-major


# ---------------------------------------------------------------------------
# Wrapper
# ---------------------------------------------------------------------------
def _pick_pack_factor(S, C, target_contract=256):
    """Largest pixel-packing factor k with C*k <= target_contract and S % k == 0,
    preferring (S // k) to stay a multiple of 128 (lane-dense chunks)."""
    kmax = max(1, target_contract // C)
    best = 1
    for k in range(1, kmax + 1):
        if S % k == 0 and (S // k) % 128 == 0:
            best = k
    if best == 1:
        for k in range(1, kmax + 1):
            if S % k == 0 and (S // k) >= 128:
                best = k
    return best


def _pick_lane_tile(L, row_bytes, max_block_bytes=2 << 20, max_lanes=16384):
    """Largest 128-multiple tile dividing L, capped by a per-block VMEM budget."""
    if L % 128 != 0:
        return L            # full-extent fallback; see TODO(synk) in the kernel
    cap = max(128, min(max_lanes, max_block_bytes // row_bytes) // 128 * 128)
    if L <= cap:
        return L
    t = cap
    while t >= 128:
        if L % t == 0:
            return t
        t -= 128
    return L


def oracle_imitation_forward(x_nchw, meta_info, params):
    """x_nchw: (B, C, H, W) float32.  meta_info: list of one-hot tensors
    (B, k_i) followed by patch_conf_score (B,).  Returns (B, output_dim)."""
    B, C, H, W = x_nchw.shape
    S = H * W

    # --- pixel packing: pure row-major reshape (no data movement, no cast) ---
    k = _pick_pack_factor(S, C)
    Ck = C * k
    L = S // k
    x_view = x_nchw.reshape(B, Ck, L)        # element (b, c*k+j, q) = x[b, c, j*L+q]

    lane_tile = _pick_lane_tile(L, Ck * 4)   # f32 row bytes
    nchunks = L // lane_tile
    acc_lanes = 128 if lane_tile % 128 == 0 else 1

    # --- meta concat (tiny, trace-time) ---
    one_hot_tensors = meta_info[:-1]
    patch_conf = meta_info[-1]
    meta = jnp.concatenate(list(one_hot_tensors) + [patch_conf[:, None]],
                           axis=1).astype(jnp.float32)
    K = meta.shape[1]

    wc, bc, w1, b1, w2, b2, w3, b3 = (params[kk] for kk in
                                      ("wc", "bc", "w1", "b1", "w2", "b2", "w3", "b3"))
    F = wc.shape[1]
    h1_dim = w1.shape[1]
    h2_dim = w2.shape[1]
    out_dim = w3.shape[1]
    Fk = F * k

    # Block-diagonal packed conv weight / bias (trace-time, tiny).
    wbd = jnp.kron(wc.T, jnp.eye(k, dtype=wc.dtype)).astype(jnp.bfloat16)  # (F*k, C*k)
    bcp = jnp.repeat(bc.reshape(F, 1), k, axis=0)                          # (F*k, 1)

    conv_kernel = functools.partial(conv_pool_kernel, feat_dim=F, k_pack=k,
                                    acc_lanes=acc_lanes, inv_s=1.0 / S)
    resident = lambda b, c: (0, 0)           # weights/bias stay resident in VMEM

    feat_pooled = pl.pallas_call(
        conv_kernel,
        out_shape=jax.ShapeDtypeStruct((B, 1, F), jnp.float32),
        grid_spec=pltpu.PrefetchScalarGridSpec(
            num_scalar_prefetch=0,
            grid=(B, nchunks),
            in_specs=[
                pl.BlockSpec((1, Ck, lane_tile), lambda b, c: (b, 0, c)),  # x (f32)
                pl.BlockSpec((Fk, Ck), resident),                          # packed weight
                pl.BlockSpec((Fk, 1), resident),                           # packed bias
            ],
            out_specs=pl.BlockSpec((1, 1, F), lambda b, c: (b, 0, 0)),
            scratch_shapes=[pltpu.VMEM((Fk, acc_lanes), jnp.float32)],     # pooling acc
        ),
        compiler_params=pltpu.CompilerParams(
            dimension_semantics=("parallel", "arbitrary")),
        cost_estimate=pl.CostEstimate(
            flops=2 * B * S * F * C,
            transcendentals=0,
            bytes_accessed=4 * B * C * S + 2 * Fk * Ck + 4 * B * F),
    )(x_view, wbd, bcp)

    # --- stage 2: batched MLP head (fc1 split as [features | meta] weights) ---
    w1f = w1[:F]                             # (F, 128)  features come first in concat
    w1m = w1[F:]                             # (K, 128)
    zero2 = lambda i: (0, 0)

    out = pl.pallas_call(
        head_kernel,
        out_shape=jax.ShapeDtypeStruct((B, out_dim), jnp.float32),
        grid_spec=pltpu.PrefetchScalarGridSpec(
            num_scalar_prefetch=0,
            grid=(1,),
            in_specs=[
                pl.BlockSpec((B, 1, F), lambda i: (0, 0, 0)),   # pooled features
                pl.BlockSpec((B, K), zero2),                    # meta
                pl.BlockSpec((F, h1_dim), zero2),               # fc1 feature part
                pl.BlockSpec((K, h1_dim), zero2),               # fc1 meta part
                pl.BlockSpec((1, h1_dim), zero2),               # b1
                pl.BlockSpec((h1_dim, h2_dim), zero2),          # fc2
                pl.BlockSpec((1, h2_dim), zero2),               # b2
                pl.BlockSpec((h2_dim, out_dim), zero2),         # fc3
                pl.BlockSpec((1, out_dim), zero2),              # b3
            ],
            out_specs=pl.BlockSpec((B, out_dim), zero2),
        ),
    )(feat_pooled, meta, w1f, w1m, b1, w2, b2, w3, b3)
    return out


# ---------------------------------------------------------------------------
# Params / reference
# ---------------------------------------------------------------------------
def init_params(key, in_ch, feat_dim, input_dim, output_dim):
    """Deterministic PyTorch-Linear-style init: U(-1/sqrt(fan_in), 1/sqrt(fan_in))."""
    ks = jax.random.split(key, 8)

    def lin(kw, kb, fan_in, fan_out):
        bound = 1.0 / jnp.sqrt(fan_in)
        w = jax.random.uniform(kw, (fan_in, fan_out), jnp.float32, -bound, bound)
        b = jax.random.uniform(kb, (1, fan_out), jnp.float32, -bound, bound)
        return w, b

    wc, bc = lin(ks[0], ks[1], in_ch, feat_dim)        # 1x1 conv as matmul
    w1, b1 = lin(ks[2], ks[3], input_dim, 128)
    w2, b2 = lin(ks[4], ks[5], 128, 64)
    w3, b3 = lin(ks[6], ks[7], 64, output_dim)
    return dict(wc=wc, bc=bc, w1=w1, b1=b1, w2=w2, b2=b2, w3=w3, b3=b3)


def reference_forward(x_nchw, meta_info, params):
    """Pure-JAX reference (bf16-matched conv inputs, f32 math)."""
    xb = x_nchw.astype(jnp.bfloat16).astype(jnp.float32)
    wc = params["wc"].astype(jnp.bfloat16).astype(jnp.float32)
    h = jnp.einsum('bchw,cf->bfhw', xb, wc) + params["bc"].reshape(1, -1, 1, 1)
    h = jnp.maximum(h, 0.0)
    feat = h.mean(axis=(2, 3))                                  # (B, F)
    meta = jnp.concatenate(list(meta_info[:-1]) + [meta_info[-1][:, None]], axis=1)
    z = jnp.concatenate([feat, meta], axis=1)
    h1 = jnp.maximum(z @ params["w1"] + params["b1"], 0.0)
    h2 = jnp.maximum(h1 @ params["w2"] + params["b2"], 0.0)
    return h2 @ params["w3"] + params["b3"]


if __name__ == "__main__":
    B, C, H, W = 2, 4, 16, 16
    FEAT = 32
    ONE_HOT_SIZES = (5, 3)
    OUTPUT_DIM = 10
    INPUT_DIM = FEAT + sum(ONE_HOT_SIZES) + 1   # features + one-hots + conf score

    key = jax.random.PRNGKey(0)
    k_x, k_m1, k_m2, k_conf, k_params = jax.random.split(key, 5)

    x = jax.random.normal(k_x, (B, C, H, W), jnp.float32)
    one_hot_a = jax.nn.one_hot(
        jax.random.randint(k_m1, (B,), 0, ONE_HOT_SIZES[0]), ONE_HOT_SIZES[0],
        dtype=jnp.float32)
    one_hot_b = jax.nn.one_hot(
        jax.random.randint(k_m2, (B,), 0, ONE_HOT_SIZES[1]), ONE_HOT_SIZES[1],
        dtype=jnp.float32)
    patch_conf = jax.random.uniform(k_conf, (B,), jnp.float32)
    meta_info = [one_hot_a, one_hot_b, patch_conf]

    params = init_params(k_params, C, FEAT, INPUT_DIM, OUTPUT_DIM)

    out = oracle_imitation_forward(x, meta_info, params)
    jax.block_until_ready(out)
    assert out.shape == (B, OUTPUT_DIM)

    ref = reference_forward(x, meta_info, params)
    max_err = float(jnp.max(jnp.abs(out - ref)))
    assert max_err < 1e-2, f"max abs err {max_err}"

    print("KERNEL_OK")
</pallas_src>

<mosaic_0001>
module attributes {stable_mosaic.version = 11 : i64} {
  func.func @conv_pool_kernel(%arg0: i32, %arg1: i32, %arg2: memref<1x8x128xf32, #tpu.memory_space<vmem>>, %arg3: memref<64x8xbf16, #tpu.memory_space<vmem>>, %arg4: memref<64x1xf32, #tpu.memory_space<vmem>>, %arg5: memref<1x1x32xf32, #tpu.memory_space<vmem>>, %arg6: memref<64x128xf32, #tpu.memory_space<vmem>>) attributes {dimension_semantics = [#tpu.dimension_semantics<parallel>, #tpu.dimension_semantics<arbitrary>], iteration_bounds = array<i64: 2, 1>, scalar_prefetch = 0 : i64, scratch_operands = 1 : i64, tpu.core_type = #tpu.core_type<tc>, window_params = [{transform_indices = @transform_0, window_bounds = array<i64: 1, 8, 128>}, {pipeline_mode = #tpu.pipeline_mode<synchronous>, transform_indices = @transform_1, window_bounds = array<i64: 64, 8>}, {pipeline_mode = #tpu.pipeline_mode<synchronous>, transform_indices = @transform_2, window_bounds = array<i64: 64, 1>}, {transform_indices = @transform_3, window_bounds = array<i64: 1, 1, 32>}]} {
    %c0_i32 = arith.constant 0 : i32
    %0 = arith.cmpi eq, %arg1, %c0_i32 : i32
    %1 = arith.extui %0 : i1 to i32
    %c0_i32_0 = arith.constant 0 : i32
    %2 = arith.cmpi ne, %1, %c0_i32_0 : i32
    scf.if %2 {
      %cst_14 = arith.constant 0.000000e+00 : f32
      %19 = vector.broadcast %cst_14 : f32 to vector<64x128xf32>
      %c0_15 = arith.constant 0 : index
      %c0_16 = arith.constant 0 : index
      %20 = vector.load %arg6[%c0_15, %c0_16] : memref<64x128xf32, #tpu.memory_space<vmem>>, vector<64x128xf32>
      tpu.vector_store %arg6[%c0_15, %c0_16], %19 {strides = array<i32>} : memref<64x128xf32, #tpu.memory_space<vmem>>, vector<64x128xf32>,
    } else {
    }
    %c0 = arith.constant 0 : index
    %c0_1 = arith.constant 0 : index
    %c0_2 = arith.constant 0 : index
    %3 = vector.load %arg2[%c0, %c0_1, %c0_2] : memref<1x8x128xf32, #tpu.memory_space<vmem>>, vector<1x8x128xf32>
    %4 = vector.shape_cast %3 : vector<1x8x128xf32> to vector<8x128xf32>
    %5 = arith.truncf %4 : vector<8x128xf32> to vector<8x128xbf16>
    %c0_3 = arith.constant 0 : index
    %c0_4 = arith.constant 0 : index
    %6 = vector.load %arg3[%c0_3, %c0_4] : memref<64x8xbf16, #tpu.memory_space<vmem>>, vector<64x8xbf16>
    %cst = arith.constant dense<0.000000e+00> : vector<64x128xf32>
    %7 = tpu.matmul %6, %5, %cst {dimension_numbers = #tpu.dot_dimension_numbers<[1], [0], [0], [1], [0, 0, 1, 1], [], []>} : vector<64x8xbf16>, vector<8x128xbf16>, vector<64x128xf32> -> vector<64x128xf32>
    %c0_5 = arith.constant 0 : index
    %c0_6 = arith.constant 0 : index
    %8 = vector.load %arg4[%c0_5, %c0_6] : memref<64x1xf32, #tpu.memory_space<vmem>>, vector<64x1xf32>
    %9 = vector.broadcast %8 : vector<64x1xf32> to vector<64x128xf32>
    %10 = arith.addf %7, %9 : vector<64x128xf32>
    %cst_7 = arith.constant 0.000000e+00 : f32
    %11 = vector.broadcast %cst_7 : f32 to vector<64x128xf32>
    %12 = arith.maximumf %10, %11 : vector<64x128xf32>
    %c0_8 = arith.constant 0 : index
    %c0_9 = arith.constant 0 : index
    %13 = vector.load %arg6[%c0_8, %c0_9] : memref<64x128xf32, #tpu.memory_space<vmem>>, vector<64x128xf32>
    %14 = arith.addf %13, %12 : vector<64x128xf32>
    %c0_10 = arith.constant 0 : index
    %c0_11 = arith.constant 0 : index
    %15 = vector.load %arg6[%c0_10, %c0_11] : memref<64x128xf32, #tpu.memory_space<vmem>>, vector<64x128xf32>
    tpu.vector_store %arg6[%c0_10, %c0_11], %14 {strides = array<i32>} : memref<64x128xf32, #tpu.memory_space<vmem>>, vector<64x128xf32>,
    %c0_i32_12 = arith.constant 0 : i32
    %16 = arith.cmpi eq, %arg1, %c0_i32_12 : i32
    %17 = arith.extui %16 : i1 to i32
    %c0_i32_13 = arith.constant 0 : i32
    %18 = arith.cmpi ne, %17, %c0_i32_13 : i32
    scf.if %18 {
      %c0_14 = arith.constant 0 : index
      %c0_15 = arith.constant 0 : index
      %19 = vector.load %arg6[%c0_14, %c0_15] : memref<64x128xf32, #tpu.memory_space<vmem>>, vector<64x128xf32>
      %20 = vector.shape_cast %19 : vector<64x128xf32> to vector<32x256xf32>
      %cst_16 = arith.constant dense<0.000000e+00> : vector<32xf32>
      %21 = vector.multi_reduction <add>, %20, %cst_16 [1] : vector<32x256xf32> to vector<32xf32>
      %cst_17 = arith.constant 3.906250e-03 : f32
      %22 = vector.broadcast %cst_17 : f32 to vector<32xf32>
      %23 = arith.mulf %21, %22 : vector<32xf32>
      %24 = vector.shape_cast %23 : vector<32xf32> to vector<1x1x32xf32>
      %c0_18 = arith.constant 0 : index
      %c0_19 = arith.constant 0 : index
      %c0_20 = arith.constant 0 : index
      %25 = vector.load %arg5[%c0_18, %c0_19, %c0_20] : memref<1x1x32xf32, #tpu.memory_space<vmem>>, vector<1x1x32xf32>
      tpu.vector_store %arg5[%c0_18, %c0_19, %c0_20], %24 {strides = array<i32>} : memref<1x1x32xf32, #tpu.memory_space<vmem>>, vector<1x1x32xf32>,
    } else {
    }
    return
  }
  func.func @transform_0(%arg0: i32, %arg1: i32) -> (i32, i32, i32) {
    %c0_i32 = arith.constant 0 : i32
    %c0_i32_0 = arith.constant 0 : i32
    return %arg0, %c0_i32, %arg1 : i32, i32, i32
  }
  func.func @transform_1(%arg0: i32, %arg1: i32) -> (i32, i32) {
    %c0_i32 = arith.constant 0 : i32
    %c0_i32_0 = arith.constant 0 : i32
    %c0_i32_1 = arith.constant 0 : i32
    return %c0_i32, %c0_i32_0 : i32, i32
  }
  func.func @transform_2(%arg0: i32, %arg1: i32) -> (i32, i32) {
    %c0_i32 = arith.constant 0 : i32
    %c0_i32_0 = arith.constant 0 : i32
    %c0_i32_1 = arith.constant 0 : i32
    return %c0_i32, %c0_i32_0 : i32, i32
  }
  func.func @transform_3(%arg0: i32, %arg1: i32) -> (i32, i32, i32) {
    %c0_i32 = arith.constant 0 : i32
    %c0_i32_0 = arith.constant 0 : i32
    %c0_i32_1 = arith.constant 0 : i32
    return %arg0, %c0_i32, %c0_i32_0 : i32, i32, i32
  }
}

</mosaic_0001>

<bundles_post_ra>
// kernel: tpu_custom_call.1
= control target key start
LH: loop header
LB: loop body
LE: loop exit
PB: predicated region body
PF: predicated region fallthrough
CT: control target
= control target key end

     0   :  { %8 = vsyncpa [#allocation4], 0  ;;  %s974_s0 = inlined_call_operand.vmem [shape: f32[2,8,128], index: 0, kind: input, shape index: {}]   ;;  %s975_s1 = inlined_call_operand.vmem [shape: bf16[64,8], index: 1, kind: input, shape index: {}]   ;;  %s976_s2 = inlined_call_operand.vmem [shape: f32[64,1], index: 2, kind: input, shape index: {}]   ;;  %s977_s3 = inlined_call_operand.hbm [shape: f32[2,1,32], index: 3, kind: output, shape index: {}]  }
   0x1   :  { %10 = vsyncpa [#allocation4 + $0x1], 0  ;;  %s822_s12 = smov 0   ;;  %s824_s13 = smov 0  }
   0x2   :  { %s826_s14 = smov 0   ;;  %s828_s15 = smov 0  }
   0x3   :  { %s830_s16 = smov 0   ;;  %s832_s17 = smov 0  }
   0x4 LB: > { %s613_s18 = sadd.s32 4294967295, %s798_s17   ;;  %s614_s19 = sadd.s32 4294967294, %s798_s17   ;;  %s798_s17 = sphi %s832_s17, %s16_s17   ;;  %s794_s16 = sphi %s830_s16, %s984_s16   ;;  %s790_s15 = sphi %s828_s15, %s983_s15   ;;  %s786_s14 = sphi %s826_s14, %s982_s14   ;;  %s782_s13 = sphi %s824_s13, %s981_s13   ;;  %s778_s12 = sphi %s822_s12, %s980_s12  }
   0x5   : > { %s28_s20 = sadd.s32 1, %s794_s16  ;;  %s105_s21 = sadd.s32 1, %s786_s14 }
   0x6   : > { %p30_p0 = scmp.ge.s32.totalorder %s28_s20, 2  ;;  %p115_p1 = scmp.ne.s32.totalorder %s786_s14, %s782_s13 }
   0x7   : > { %p116_p2 = scmp.eq.s32.totalorder %s613_s18, 1  ;;  %p121_p3 = scmp.ne.s32.totalorder %s782_s13, %s778_s12 }
   0x8   : > { %s986_s20 = smov (%p30_p0, %s28_s20), 0  ;;  %p122_p5 = scmp.eq.s32.totalorder %s614_s19, 1 }
   0x9   : > { %p862_p4 = por %p116_p2, %p115_p1  ;;  %s102_s23 = ssub.s32 %s794_s16, %s986_s20 }
   0xa   : > { %p617_p6 = scmp.ge.s32.totalorder %s798_s17, 1  ;;  %p103_p7 = scmp.eq.s32.totalorder %s102_s23, 0 }
   0xb   : > { %p869_p8 = por %p122_p5, %p121_p3  ;;  %p156_p9 = scmp.lt.s32.totalorder %s798_s17, 3 }
   0xc   : > { %s875_s25 = scalar_select %p103_p7, %s786_s14, %s105_s21  }
   0xd   : > { %p157_p10 = pnand %p617_p6, %p156_p9 }
   0xe   : > { %p181_p11 = scmp.lt.s32.totalorder (!%p157_p10), %s790_s15, 1  ;;  %v716_v0 = vld [vmem:[%s975_s1] sm:$0xff] (!%p157_p10)   ;;  %vm279_vm0 = vcmask (!%p157_p10), 64512   ;;  %v717_v1 = vld [vmem:[%s975_s1 + $0x10] sm:$0xff] (!%p157_p10)   ;;  %v800_v2 = vmov (!%p157_p10), 0   ;;  %vm292_vm1 = vcmask (!%p157_p10), 1043456  }
   0xf   : > { %160 = sbr.rel (%p157_p10) target bundleno = 433 (0x1b1), region = 32  ;;  %645 = vmatprep.mubr.msk.bf16.mxu0 (!%p157_p10), %vm279_vm0, %v716_v0  ;;  %649 = vmatprep.mubr.msk.bf16.mxu1 (!%p157_p10), %vm279_vm0, %v717_v1  ;;  %v213_v3 = vld [vmem:[%s976_s2 + $0x10] sm:$0xff] (!%p157_p10)  ;;  %v211_v4 = vld [vmem:[%s976_s2] sm:$0xff] (!%p157_p10)  ;;  %v214_v7 = vld [vmem:[%s976_s2 + $0x18] sm:$0xff] (!%p157_p10)  ;;  %vm515_vm2 = vcmask (!%p157_p10), 130112   ;;  %vm522_vm3 = vcmask (!%p157_p10), 195712  }
  0x10   : > { %715 = vset.pattern.permute.xlu1 (!%p157_p10), %v800_v2  ;;  %714 = vset.pattern.permute.xlu0 (!%p157_p10), %v800_v2  ;;  %v212_v8 = vld [vmem:[%s976_s2 + $0x8] sm:$0xff] (!%p157_p10)  ;;  %v719_v11 = vld [vmem:[%s975_s1 + $0x18] sm:$0xff] (!%p157_p10)   ;;  %v215_v13 = vld [vmem:[%s976_s2 + $0x20] sm:$0xff] (!%p157_p10)  ;;  %s635_s18 = sshll.u32 (!%p157_p10), %s790_s15, 4  ;;  %vm529_vm4 = vcmask (!%p157_p10), 261312   ;;  %vm532_vm5 = vcmask (!%p157_p10), 253952  }
  0x11   : > { %231 = vperm.xlu1 (!%p157_p10), %715, %v213_v3   ;;  %221 = vperm.xlu0 (!%p157_p10), %714, %v211_v4   ;;  %v718_v10 = vld [vmem:[%s975_s1 + $0x8] sm:$0xff] (!%p157_p10)   ;;  %v218_v14 = vld [vmem:[%s976_s2 + $0x38] sm:$0xff] (!%p157_p10)  ;;  %v217_v15 = vld [vmem:[%s976_s2 + $0x30] sm:$0xff] (!%p157_p10)  ;;  %v504_v4 = vlaneseq (!%p157_p10)  ;;  %s927_s27 = scalar_lea.hbm (!%p157_p10), %s977_s3, %s635_s18  ;;  %s801_s29 = smov (!%p157_p10), [#allocation3]  }
  0x12   : > { %v216_v12 = vld [vmem:[%s976_s2 + $0x28] sm:$0xff] (!%p157_p10)  ;;  %s724_s30 = sshll.u32 (!%p157_p10), %s801_s29, 4  ;;  %s725_s30 = int_to_ptr.vmem [resolvable:$false] %s724_s30 }
  0x15   : > { %236 = vperm.xlu1 (!%p157_p10), %715, %v214_v7   ;;  %226 = vperm.xlu0 (!%p157_p10), %714, %v212_v8  }
  0x16   : > { %s182_s28 = scalar_select %p181_p11, %s790_s15, 1 }
  0x18   : > { %s618_s4 = sshll.u32 %s182_s28, 3 }
  0x19   : > { %s187_s11 = scalar_lea.vmem %s974_s0, %s618_s4  ;;  %246 = vperm.xlu1 %715, %v216_v12   ;;  %241 = vperm.xlu0 %714, %v215_v13   ;;  %s726_s4 = scalar_lea.vmem %s725_s30, 32 }
  0x1a   : > { %v201_v5 = vld [vmem:[%s187_s11] sm:$0xff]  ;;  %s179_s11 = sand.u32 1, %s782_s13  }
  0x1b   : > { %v202_v6 = vpack.c.bf16 %v201_v5, %v201_v5  ;;  %v505_v5 = vand.u32 127, %v504_v4  ;;  %s180_s19 = scalar_lea.vmem [#allocation3], %s179_s11  ;;  %s535_s15 = scalar_lea.sflag [#allocation4], %s179_s11 }
  0x1c   : > { %s547_s21 = sshll.u32 %s180_s19, 4  ;;  %s929_s21 = int_to_ptr.vmem [resolvable:$true] %s547_s21 }
  0x1d   : > { %655 = vmatprep.subr.msk.bf16.mxu0 %vm292_vm1, %v202_v6  ;;  %656 = vmatprep.subr.msk.bf16.mxu1 %vm292_vm1, %v202_v6  ;;  %v294_v9 = vsel %vm292_vm1, %v202_v6, 0  ;;  %v507_v6 = vshrl.u32 %v504_v4, 7  ;;  %v510_v7 = vadd.s32 4294967288, %v505_v5  ;;  %s720_s28 = scalar_lea.vmem %s929_s21, 16  ;;  %p727_p1 = scmp.lt.s32.totalorder %s929_s21, %s725_s30 }
  0x1e   : > { %644 = vmatpush3.bf16.msra.mxu0 %v294_v9  ;;  %654 = vmatpush3.bf16.msra.mxu1 %v294_v9  ;;  %p721_p12 = scmp.ne.s32.totalorder %s929_s21, %s720_s28  ;;  %p728_p2 = scmp.lt.s32.totalorder %s726_s4, %s720_s28 }
  0x1f   : > { %256 = vperm.xlu1 %715, %v218_v14   ;;  %251 = vperm.xlu0 %714, %v217_v15   ;;  %v508_v13 = vsub.s32 %v505_v5, %v507_v6  ;;  %v524_v15 = vadd.s32 4294967272, %v505_v5 }
  0x20   : > { %p722_p13 = pnand %p721_p12, %p862_p4  ;;  %p729_p3 = por %p728_p2, %p727_p1 }
  0x21   : > { %646 = vmatmul.mubr.msk.bf16.vlgmr.msra.gmra.mrb[0].mxu0 %vm279_vm0, %v718_v10  ;;  %650 = vmatmul.mubr.msk.bf16.vlgmr.msra.gmra.mrb[0].mxu1 %vm279_vm0, %v719_v11  ;;  %v517_v10 = vadd.s32 4294967280, %v505_v5  ;;  %v513_v11 = vsub.s32 %v510_v7, %v507_v6 }
  0x22   : > { %p723_p0 = pneg %p722_p13 }
  0x24   : > { %p730_p5 = pnand %p729_p3, %p723_p0 }
  0x90   : > { %v222_v16 = vpop.permute.xlu0 %221  ;;  %v232_v17 = vpop.permute.xlu1 %231 }
  0x94   : > { %v227_v18 = vpop.permute.xlu0 %226  ;;  %v237_v19 = vpop.permute.xlu1 %236 }
  0x98   : > { %v242_v20 = vpop.permute.xlu0 %241  ;;  %v247_v21 = vpop.permute.xlu1 %246 }
  0x9e   : > { %v252_v22 = vpop.permute.xlu0 %251  ;;  %v257_v23 = vpop.permute.xlu1 %256 }
  0xf4   : > { %v647_v24 = vpop.f32.mrb[0].mxu0  ;;  %v651_v25 = vpop.f32.mrb[0].mxu1 }
  0xf5   : > { %v339_v26 = vadd.f32 %v647_v24, %v232_v17  ;;  %v355_v27 = vadd.f32 %v651_v25, %v252_v22  ;;  %v330_v28 = vpop.f32.mrb[1].mxu0  ;;  %v346_v29 = vpop.f32.mrb[1].mxu1 }
  0xf6   : > { %v331_v30 = vadd.f32 %v330_v28, %v222_v16  ;;  %v347_v31 = vadd.f32 %v346_v29, %v242_v20  ;;  %v648_v32 = vpop.f32.mrb[2].mxu0  ;;  %v652_v33 = vpop.f32.mrb[2].mxu1  ;;  %v520_v16 = vsub.s32 %v517_v10, %v507_v6 }
  0xf7   : > { %v363_v34 = vmax.f32 %v339_v26, 0.0  ;;  %v367_v35 = vmax.f32 %v355_v27, 0.0  ;;  %v342_v36 = vadd.f32 %v648_v32, %v237_v19  ;;  %v358_v37 = vadd.f32 %v652_v33, %v257_v23  ;;  %v333_v38 = vpop.f32.mrb[3].mxu0  ;;  %v349_v39 = vpop.f32.mrb[3].mxu1 }
  0xf8   : > { %v361_v40 = vmax.f32 %v331_v30, 0.0  ;;  %v365_v41 = vmax.f32 %v347_v31, 0.0  ;;  %v334_v42 = vadd.f32 %v333_v38, %v227_v18  ;;  %v350_v43 = vadd.f32 %v349_v39, %v247_v21 }
  0xf9   : > { %v364_v44 = vmax.f32 %v342_v36, 0.0  ;;  %v368_v45 = vmax.f32 %v358_v37, 0.0  ;;  %387 = vst [vmem:[#allocation2 + $0x10] sm:$0xff] %v363_v34  ;;  %391 = vst [vmem:[#allocation2 + $0x30] sm:$0xff] %v367_v35  ;;  %v527_v21 = vsub.s32 %v524_v15, %v507_v6 }
  0xfa   : > { %v362_v46 = vmax.f32 %v334_v42, 0.0  ;;  %v366_v47 = vmax.f32 %v350_v43, 0.0  ;;  %385 = vst [vmem:[#allocation2] sm:$0xff] %v361_v40  ;;  %389 = vst [vmem:[#allocation2 + $0x20] sm:$0xff] %v365_v41 }
  0xfb   : > { %388 = vst [vmem:[#allocation2 + $0x18] sm:$0xff] %v364_v44  ;;  %392 = vst [vmem:[#allocation2 + $0x38] sm:$0xff] %v368_v45 }
  0xfc   : > { %386 = vst [vmem:[#allocation2 + $0x8] sm:$0xff] %v362_v46  ;;  %390 = vst [vmem:[#allocation2 + $0x28] sm:$0xff] %v366_v47 }
 0x100   : > { %v629_v48 = vld.sshfl [vmem:[#allocation2 + $0x10] sm:$0xff pattern:$0x75316420] }
 0x101   : > { %v627_v50 = vld.sshfl [vmem:[#allocation2] sm:$0xff pattern:$0x75316420]  ;;  %v633_v63 = vld.sshfl [vmem:[#allocation2 + $0x30] sm:$0xff pattern:$0x75316420] }
 0x102   : > { %v630_v49 = vld.sshfl [vmem:[#allocation2 + $0x18] sm:$0xff pattern:$0x75316420]  ;;  %v631_v58 = vld.sshfl [vmem:[#allocation2 + $0x20] sm:$0xff pattern:$0x75316420] }
 0x103   : > { %v470_v51 = vcombine.low %v629_v48, %v630_v49  ;;  %v471_v52 = vcombine.high %v629_v48, %v630_v49  ;;  %v628_v53 = vld.sshfl [vmem:[#allocation2 + $0x8] sm:$0xff pattern:$0x75316420]  ;;  %v634_v62 = vld.sshfl [vmem:[#allocation2 + $0x38] sm:$0xff pattern:$0x75316420] }
 0x104   : > { %v632_v54 = vld.sshfl [vmem:[#allocation2 + $0x28] sm:$0xff pattern:$0x75316420]  ;;  %v468_v55 = vcombine.low %v627_v50, %v628_v53  ;;  %v469_v56 = vcombine.high %v627_v50, %v628_v53  ;;  %v474_v1 = vcombine.low %v633_v63, %v634_v62  ;;  %v475_v2 = vcombine.high %v633_v63, %v634_v62 }
 0x105   : > { %v487_v57 = vadd.f32 %v471_v52, %v470_v51  ;;  %v472_v60 = vcombine.low %v631_v58, %v632_v54  ;;  %v473_v61 = vcombine.high %v631_v58, %v632_v54 }
 0x106   : > { %v484_v59 = vadd.f32 %v469_v56, %v468_v55  ;;  %v493_v3 = vadd.f32 %v475_v2, %v474_v1 }
 0x107   : > { %488 = vadd.xlane.f32.xlu1 %v487_v57  ;;  %v490_v0 = vadd.f32 %v473_v61, %v472_v60 }
 0x108   : > { %485 = vadd.xlane.f32.xlu0 %v484_v59 }
 0x10c   : > { %491 = vadd.xlane.f32.xlu0 %v490_v0 }
 0x110   : > { %494 = vadd.xlane.f32.xlu0 %v493_v3 }
 0x194   : > { %v489_v8 = vpop.xlane.xlu1 %488 }
 0x195   : > { %v486_v9 = vpop.xlane.xlu0 %485  ;;  %v497_v12 = vmul.f32 0.00390625, %v489_v8 }
 0x196   : > { %v496_v14 = vmul.f32 0.00390625, %v486_v9 }
 0x197   : > { %v514_v19 = vrot.slane %v497_v12, %v513_v11 }
 0x198   : > { %v509_v20 = vrot.slane %v496_v14, %v508_v13 }
 0x199   : > { %v492_v17 = vpop.xlane.xlu0 %491 }
 0x19a   : > { %v498_v18 = vmul.f32 0.00390625, %v492_v17  ;;  %v516_v25 = vsel %vm515_vm2, %v514_v19, %v509_v20 }
 0x19c   : > { %v521_v22 = vrot.slane %v498_v18, %v520_v16 }
 0x19d   : > { %v495_v23 = vpop.xlane.xlu0 %494 }
 0x19e   : > { %v499_v24 = vmul.f32 0.00390625, %v495_v23  ;;  %v523_v27 = vsel %vm522_vm3, %v521_v22, %v516_v25 }
 0x1a0   : > { %v528_v26 = vrot.slane %v499_v24, %v527_v21 }
 0x1a2   : > { %v530_v28 = vsel %vm529_vm4, %v528_v26, %v523_v27 }
 0x1a3   : > { %533 = vst.msk [vmem:[%s180_s19] sm:$0x1] %vm532_vm5, %v530_v28 }
 0x1a4   : > { %733 = shalt.err (!%p730_p5)
}
 0x1a5   : > { %s734_s5 = scalar_lea.hbm %s927_s27, 16  ;;  %s738_s8 = scalar_lea.hbm %s977_s3, 32 }
 0x1a6   : > { %p735_p6 = scmp.ne.s32.totalorder %s927_s27, %s734_s5  ;;  %p739_p10 = scmp.lt.u32.totalorder %s927_s27, %s977_s3 }
 0x1a7   : > { %p740_p11 = scmp.lt.u32.totalorder %s738_s8, %s734_s5  ;;  %p742_p13 = scmp.lt.u32.totalorder %s734_s5, %s927_s27 }
 0x1a8   : > { %p736_p7 = pnand %p735_p6, %p862_p4 }
 0x1a9   : > { %p741_p12 = por %p740_p11, %p739_p10 }
 0x1aa   : > { %p737_p9 = pneg %p736_p7 }
 0x1ab   : > { %p743_p0 = por %p742_p13, %p741_p12 }
 0x1ad   : > { %p744_p1 = pnand %p743_p0, %p737_p9 }
 0x1af   : > { %747 = shalt.err (!%p744_p1)
}
 0x1b0   : > { %657 = dma.vmem_to_hbm [thread:$0]  (%p862_p4), %s929_s21, 16, %s927_s27, %s535_s15  }
 0x1b1 PF: > { %p663_p2 = scmp.ge.s32.totalorder %s798_s17, 2  ;;  %s559_s11 = sand.u32 1, %s778_s12  }
 0x1b2   : > { %s560_s18 = scalar_lea.sflag [#allocation4], %s559_s11 }
 0x1b3   : > { %p660_p3 = pnand %p663_p2, %p869_p8 }
 0x1b5   : > { %773 = dma.done.wait (!%p660_p3), %s560_s18, 16  }
 0x1b6   : > { %775 = vsyncadd (!%p660_p3), %s560_s18, 4294967280  ;;  %s16_s17 = sadd.s32 1, %s798_s17   ;;  %s980_s12 = smov %s782_s13 }
 0x1b7   : > { %p13_p5 = scmp.ge.s32.totalorder %s16_s17, 4   ;;  %s981_s13 = smov %s786_s14 }
 0x1b8   : > { %s982_s14 = smov %s875_s25  ;;  %s983_s15 = smov %s794_s16 }
 0x1b9   : > { %s984_s16 = smov %s986_s20  ;;  %15 = sbr.rel (!%p13_p5) target bundleno = 4 (0x4), region = 75 }
 0x1c0   :  { %564 = vsyncpa [#allocation4], 1 }
 0x1c1   :  { %566 = vsyncpa [#allocation4 + $0x1], 1 }

</bundles_post_ra>
